<compile_context>
chip_gen: v7x
topology: tpu7x:2x2x1
jax: 0.10.0
libtpu: 0.0.40
codegen_flags: <defaults>
</compile_context>

<pallas_src>
import jax
import jax.numpy as jnp
from jax.experimental import pallas as pl
from jax.experimental.pallas import tpu as pltpu

_LANES = 128
_SUBLANES = 8
_TILE_ROWS = 4096              # 4096x128 f32 = 2 MiB per block; in+out double-buffered ~ 8 MiB
_MIN_GRID_STEPS = 4            # keep >= 4 grid steps so v7x's two TensorCores each stream >= 2
_PALLAS_MIN_ELEMENTS = 1 << 20 # below this, a single fused XLA multiply beats any kernel launch


def _round_up(a, b):
    return ((a + b - 1) // b) * b


def _linear_kernel(w_ref, x_ref, o_ref):
    # w_ref: (1,) scalar weight in SMEM (scalar prefetch).
    # x_ref / o_ref: (tile_r, 128) lane-dense VMEM tiles.
    w = w_ref[0]
    # VPU broadcast-multiply. The f32 upcast is free (VPU has huge slack; v5e has no bf16
    # VALU); HBM arrays stay in the caller's dtype, which is the only thing that matters
    # for this bandwidth-bound op.
    o_ref[...] = (x_ref[...].astype(jnp.float32) * w).astype(o_ref.dtype)


def linear_forward(x, weight, *, tile_rows=_TILE_ROWS, use_pallas=None):
    """LinearModel forward: y = x @ W^T with W of shape [1, 1], no bias.  x: [N, 1] -> [N, 1]."""
    n, in_f = x.shape
    out_f, in_f2 = weight.shape
    assert in_f == 1 and in_f2 == 1 and out_f == 1, "LinearModel is Linear(1, 1, bias=False)"

    total = n  # n * in_features with in_features == 1
    if use_pallas is None:
        use_pallas = total >= _PALLAS_MIN_ELEMENTS
    if not use_pallas:
        # Small N: let XLA fuse the scalar broadcast-multiply (zero pad/slice/launch overhead).
        return (x * weight[0, 0]).astype(x.dtype).reshape(n, out_f)

    rows = pl.cdiv(total, _LANES)

    if total % _LANES == 0:
        # Fast path: lane-dense reshape is a free bitcast — no pad, no output slice,
        # no extra HBM passes around the custom-call boundary.
        rows_padded = rows
        x2d = x.reshape(rows_padded, _LANES)
        padded = False
    else:
        # Ragged N: pad only up to one sublane tile (<= 1023 extra elements); the grid's
        # partial last block is handled by Pallas, so no padding up to tile_r.
        rows_padded = _round_up(rows, _SUBLANES)
        padded_total = rows_padded * _LANES
        flat = jnp.pad(x.reshape(-1), (0, padded_total - total))
        x2d = flat.reshape(rows_padded, _LANES)
        padded = True

    # Tile the row axis: as large as sensible to amortize per-step overhead, but capped so
    # the "parallel" grid keeps >= _MIN_GRID_STEPS steps (v7x shards this axis across its
    # two TensorCores). tile_r is always a multiple of 8 sublanes.
    target = _round_up(pl.cdiv(rows_padded, _MIN_GRID_STEPS), _SUBLANES)
    tile_r = max(_SUBLANES, min(tile_rows, target))
    grid = (pl.cdiv(rows_padded, tile_r),)

    # Scalar weight -> SMEM via scalar prefetch (32-bit scalar path; no VMEM tile, no W^T).
    w_scalar = weight.reshape(-1).astype(jnp.float32)  # shape (1,)

    out2d = pl.pallas_call(
        _linear_kernel,
        out_shape=jax.ShapeDtypeStruct((rows_padded, _LANES), x.dtype),
        grid_spec=pltpu.PrefetchScalarGridSpec(
            num_scalar_prefetch=1,
            grid=grid,
            # index_maps receive the scalar-prefetch ref as a trailing positional arg.
            in_specs=[pl.BlockSpec((tile_r, _LANES), lambda i, w: (i, 0))],
            out_specs=pl.BlockSpec((tile_r, _LANES), lambda i, w: (i, 0)),
        ),
        compiler_params=pltpu.CompilerParams(
            dimension_semantics=("parallel",),
        ),
    )(w_scalar, x2d)

    if padded:
        # Only the ragged path needs the output slice; the aligned path returns a free reshape.
        return out2d.reshape(-1)[:total].reshape(n, out_f)
    return out2d.reshape(n, out_f)


if __name__ == "__main__":
    key = jax.random.PRNGKey(0)
    kw, k1, k2, k3 = jax.random.split(key, 4)

    # Deterministic weight mimicking nn.Linear(1, 1, bias=False) init range.
    weight = jax.random.uniform(kw, (1, 1), dtype=jnp.float32, minval=-1.0, maxval=1.0)

    # 1) Small batch consistent with the module (auto-dispatch -> fused XLA bypass path).
    x_small = jax.random.normal(k1, (8, 1), dtype=jnp.float32)
    y_small = linear_forward(x_small, weight)
    jax.block_until_ready(y_small)
    assert y_small.shape == (8, 1)
    assert jnp.allclose(y_small, x_small @ weight.T, atol=1e-6), "small-N mismatch vs reference"

    # 2) Ragged N (not a multiple of 128), forced through the Pallas kernel to exercise the
    #    one-sublane pad, the partial last block, and the multi-step parallel grid.
    n_ragged = 270_000  # rows = 2110 -> padded to 2112, tile_r = 528, grid = (4,)
    x_ragged = jax.random.normal(k2, (n_ragged, 1), dtype=jnp.float32)
    y_ragged = linear_forward(x_ragged, weight, use_pallas=True)
    jax.block_until_ready(y_ragged)
    assert y_ragged.shape == (n_ragged, 1)
    assert jnp.allclose(y_ragged, x_ragged @ weight.T, atol=1e-6), "ragged-N mismatch vs reference"

    # 3) Lane-aligned large N (multiple of 128), auto-dispatched to the Pallas fast path:
    #    free reshape in/out, no pad, no slice, grid = (4,) so v7x's two TCs both stream.
    n_big = 10_240 * 128  # 1,310,720 elements -> rows = 10240, tile_r = 2560, grid = (4,)
    x_big = jax.random.normal(k3, (n_big, 1), dtype=jnp.float32)
    y_big = linear_forward(x_big, weight)
    jax.block_until_ready(y_big)
    assert y_big.shape == (n_big, 1)
    assert jnp.allclose(y_big, x_big @ weight.T, atol=1e-6), "large-N mismatch vs reference"

    print("KERNEL_OK")
</pallas_src>

<mosaic_0001>
module attributes {stable_mosaic.version = 11 : i64} {
  func.func @_linear_kernel(%arg0: i32, %arg1: memref<1xf32, #tpu.memory_space<smem>>, %arg2: memref<528x128xf32, #tpu.memory_space<vmem>>, %arg3: memref<528x128xf32, #tpu.memory_space<vmem>>) attributes {dimension_semantics = [#tpu.dimension_semantics<parallel>], iteration_bounds = array<i64: 4>, scalar_prefetch = 1 : i64, scratch_operands = 0 : i64, tpu.core_type = #tpu.core_type<tc>, window_params = [{transform_indices = @transform_0, window_bounds = array<i64: 528, 128>}, {transform_indices = @transform_1, window_bounds = array<i64: 528, 128>}]} {
    %c0 = arith.constant 0 : index
    %0 = memref.load %arg1[%c0] : memref<1xf32, #tpu.memory_space<smem>>
    %c0_0 = arith.constant 0 : index
    %c0_1 = arith.constant 0 : index
    %1 = vector.load %arg2[%c0_0, %c0_1] : memref<528x128xf32, #tpu.memory_space<vmem>>, vector<528x128xf32>
    %2 = vector.broadcast %0 : f32 to vector<528x128xf32>
    %3 = arith.mulf %1, %2 : vector<528x128xf32>
    %c0_2 = arith.constant 0 : index
    %c0_3 = arith.constant 0 : index
    %4 = vector.load %arg3[%c0_2, %c0_3] : memref<528x128xf32, #tpu.memory_space<vmem>>, vector<528x128xf32>
    tpu.vector_store %arg3[%c0_2, %c0_3], %3 {strides = array<i32>} : memref<528x128xf32, #tpu.memory_space<vmem>>, vector<528x128xf32>,
    return
  }
  func.func @transform_0(%arg0: i32, %arg1: memref<1xf32, #tpu.memory_space<smem>>) -> (i32, i32) {
    %c0_i32 = arith.constant 0 : i32
    %c0_i32_0 = arith.constant 0 : i32
    return %arg0, %c0_i32 : i32, i32
  }
  func.func @transform_1(%arg0: i32, %arg1: memref<1xf32, #tpu.memory_space<smem>>) -> (i32, i32) {
    %c0_i32 = arith.constant 0 : i32
    %c0_i32_0 = arith.constant 0 : i32
    return %arg0, %c0_i32 : i32, i32
  }
}

</mosaic_0001>

<bundles_post_ra>
// kernel: tpu_custom_call.1
= control target key start
LH: loop header
LB: loop body
LE: loop exit
PB: predicated region body
PF: predicated region fallthrough
CT: control target
= control target key end

     0   :  { %s971_s0 = inlined_call_operand.<no memory space> [shape: f32[1], index: 0, kind: input, shape index: {}]   ;;  %s972_s1 = inlined_call_operand.hbm [shape: f32[2112,128], index: 1, kind: input, shape index: {}]   ;;  %s973_s2 = inlined_call_operand.hbm [shape: f32[2112,128], index: 2, kind: output, shape index: {}]  }
   0x1   :  { %7 = sst [smem:[#allocation3]] %s971_s0 }
   0x2   :  { %8 = vsyncpa [#allocation5], 0 }
   0x3   :  { %10 = vsyncpa [#allocation5 + $0x1], 0 }
   0x4   :  { %11 = vsyncpa [#allocation6], 0 }
   0x5   :  { %13 = vsyncpa [#allocation6 + $0x1], 0  ;;  %s610_s11 = smov 0   ;;  %s612_s12 = smov 0  }
   0x6   :  { %s614_s13 = smov 0   ;;  %s616_s14 = smov 0  }
   0x7 LB: > { %s631_s0 = sadd.s32 4294967295, %s584_s14   ;;  %s426_s15 = sadd.s32 4294967294, %s584_s14   ;;  %s584_s14 = sphi %s616_s14, %s984_s14   ;;  %s580_s13 = sphi %s614_s13, %s983_s13   ;;  %s576_s12 = sphi %s612_s12, %s982_s12   ;;  %s572_s11 = sphi %s610_s11, %s981_s11  }
   0x8   : > { %s635_s16 = sadd.s32 1, %s584_s14   ;;  %s26_s17 = sadd.s32 1, %s580_s13 }
   0x9   : > { %s23_s18 = ssub.s32 %s584_s14, %s635_s16  ;;  %p33_p0 = scmp.ne.s32.totalorder %s580_s13, %s576_s12 }
   0xa   : > { %p24_p1 = scmp.eq.s32.totalorder %s23_s18, 0  ;;  %p34_p2 = scmp.eq.s32.totalorder %s584_s14, 0 }
   0xb   : > { %p39_p3 = scmp.ne.s32.totalorder %s576_s12, %s572_s11  ;;  %p40_p4 = scmp.eq.s32.totalorder %s631_s0, 0 }
   0xc   : > { %s647_s19 = scalar_select %p24_p1, %s580_s13, %s26_s17  }
   0xd   : > { %p35_p5 = por %p34_p2, %p33_p0  ;;  %p649_p6 = por %p40_p4, %p39_p3 }
   0xe   : > { %p63_p7 = scmp.eq.s32.totalorder %s631_s0, 3  ;;  %p69_p8 = scmp.eq.s32.totalorder %s426_s15, 3 }
   0xf   : > { %p450_p9 = scmp.lt.s32.totalorder %s584_s14, 4  ;;  %s89_s23 = sand.u32 1, %s580_s13  }
  0x10   : > { %p655_p10 = por %p63_p7, %p33_p0  ;;  %p659_p11 = por %p69_p8, %p39_p3 }
  0x11   : > { %s434_s24 = smul.u32 8448, %s584_s14  ;;  %p670_p12 = pnand %p450_p9, %p35_p5 }
  0x12   : > { %s976_s21 = scalar_select %p655_p10, 1, 0 }
  0x13   : > { %s977_s22 = scalar_select %p659_p11, 1, 0 }
  0x14   : > { %s436_s25 = smul.u32 528, %s89_s23  ;;  %s668_s28 = scalar_lea.hbm %s972_s1, %s434_s24 }
  0x15   : > { %s676_s4 = scalar_lea.sflag [#allocation5], %s89_s23  ;;  %s488_s5 = scalar_lea.hbm %s668_s28, 8448 }
  0x16   : > { %s93_s30 = scalar_lea.vmem [#allocation4], %s436_s25  ;;  %p489_p13 = scmp.ne.s32.totalorder %s668_s28, %s488_s5 }
  0x17   : > { %s100_s3 = sshll.u32 %s93_s30, 4  ;;  %p490_p0 = pneg %p670_p12  ;;  %s674_s3 = int_to_ptr.vmem [resolvable:$true] %s100_s3 }
  0x18   : > { %s493_s8 = scalar_lea.hbm %s972_s1, 33792  ;;  %p494_p3 = scmp.lt.u32.totalorder %s668_s28, %s972_s1 }
  0x19   : > { %p491_p1 = pnand %p490_p0, %p489_p13  ;;  %p495_p4 = scmp.lt.u32.totalorder %s493_s8, %s488_s5 }
  0x1a   : > { %p497_p7 = scmp.lt.u32.totalorder %s488_s5, %s668_s28 }
  0x1b   : > { %p492_p2 = pneg %p491_p1  ;;  %p496_p5 = por %p495_p4, %p494_p3 }
  0x1d   : > { %p498_p8 = por %p497_p7, %p496_p5 }
  0x1f   : > { %p499_p9 = pnand %p498_p8, %p492_p2 }
  0x21   : > { %502 = shalt.err (!%p499_p9)
}
  0x22   : > { %s503_s15 = scalar_lea.vmem %s674_s3, 8448  ;;  %s586_s17 = smov [#allocation4]  }
  0x23   : > { %p504_p13 = scmp.ne.s32.totalorder %s674_s3, %s503_s15  ;;  %s508_s18 = sshll.u32 %s586_s17, 4  ;;  %s509_s18 = int_to_ptr.vmem [resolvable:$false] %s508_s18 }
  0x24   : > { %s510_s23 = scalar_lea.vmem %s509_s18, 16896  ;;  %p511_p10 = scmp.lt.s32.totalorder %s674_s3, %s509_s18 }
  0x25   : > { %p506_p1 = pnand %p504_p13, %p490_p0  ;;  %p512_p3 = scmp.lt.s32.totalorder %s510_s23, %s503_s15 }
  0x27   : > { %p507_p11 = pneg %p506_p1  ;;  %p513_p4 = por %p512_p3, %p511_p10 }
  0x29   : > { %p514_p5 = pnand %p513_p4, %p507_p11 }
  0x2b   : > { %517 = shalt.err (!%p514_p5)
}
  0x2c   : > { %s587_s24 = smov 128   ;;  %s588_s25 = smov 8  }
  0x2d   : > { %445 = dma.hbm_to_vmem [thread:$0]  (!%p670_p12), %s668_s28, 8448, %s674_s3, %s676_s4, %s587_s24, %s587_s24, %s588_s25  }
  0x2e   : > { %p430_p0 = scmp.ge.s32.totalorder %s584_s14, 1  ;;  %p108_p2 = scmp.lt.s32.totalorder %s584_s14, 5 }
  0x30   : > { %p109_p7 = pnand %p430_p0, %p108_p2 }
  0x31   : > { %s707_s26 = sand.u32 (!%p109_p7), 1, %s576_s12  }
  0x32   : > { %112 = sbr.rel (%p109_p7) target bundleno = 114 (0x72), region = 24  ;;  %s115_s30 = scalar_lea.sflag (!%p109_p7), [#allocation5], %s707_s26 }
  0x33   : > { %s437_s27 = smul.u32 (!%p109_p7), 528, %s707_s26 }
  0x35   : > { %s711_s5 = scalar_lea.vmem (!%p109_p7), [#allocation4], %s437_s27 }
  0x39   : > { %563 = dma.done.wait (%p649_p6), %s115_s30, 8448  }
  0x3a   : > { %565 = vsyncadd (%p649_p6), %s115_s30, 4294958848  ;;  %s139_s28 = sld [smem:[#allocation3]]  ;;  %v140_v0 = vld [vmem:[%s711_s5] sm:$0xff]  ;;  %v141_v2 = vld [vmem:[%s711_s5 + $0x8] sm:$0xff]  ;;  %s734_s20 = scalar_lea.vmem [#allocation7], %s437_s27 }
  0x3b   : > { %v142_v3 = vld [vmem:[%s711_s5 + $0x10] sm:$0xff]  ;;  %v143_v7 = vld [vmem:[%s711_s5 + $0x18] sm:$0xff]  ;;  %v144_v8 = vld [vmem:[%s711_s5 + $0x20] sm:$0xff]  ;;  %s435_s29 = smul.u32 8448, %s631_s0  ;;  %s353_s3 = sshll.u32 %s734_s20, 4  ;;  %s922_s3 = int_to_ptr.vmem [resolvable:$true] %s353_s3 }
  0x3c   : > { %v145_v9 = vld [vmem:[%s711_s5 + $0x28] sm:$0xff]  ;;  %v146_v13 = vld [vmem:[%s711_s5 + $0x30] sm:$0xff]  ;;  %v147_v14 = vld [vmem:[%s711_s5 + $0x38] sm:$0xff]  ;;  %s340_s0 = scalar_lea.sflag [#allocation6], %s707_s26  ;;  %s518_s8 = scalar_lea.vmem %s922_s3, 8448 }
  0x3d   : > { %v148_v15 = vld [vmem:[%s711_s5 + $0x40] sm:$0xff]  ;;  %v149_v19 = vld [vmem:[%s711_s5 + $0x48] sm:$0xff]  ;;  %v150_v20 = vld [vmem:[%s711_s5 + $0x50] sm:$0xff]  ;;  %s914_s7 = scalar_lea.hbm %s973_s2, %s435_s29  ;;  %p519_p6 = scmp.ne.s32.totalorder %s922_s3, %s518_s8 }
  0x3e   : > { %v151_v21 = vld [vmem:[%s711_s5 + $0x58] sm:$0xff]  ;;  %v152_v25 = vld [vmem:[%s711_s5 + $0x60] sm:$0xff]  ;;  %v153_v26 = vld [vmem:[%s711_s5 + $0x68] sm:$0xff]  ;;  %p979_p10 = scmp.ne.s32.totalorder %s976_s21, 0  ;;  %s589_s9 = smov [#allocation7]  }
  0x3f   : > { %v154_v27 = vld [vmem:[%s711_s5 + $0x70] sm:$0xff]  ;;  %v155_v31 = vld [vmem:[%s711_s5 + $0x78] sm:$0xff]  ;;  %v156_v32 = vld [vmem:[%s711_s5 + $0x80] sm:$0xff]  ;;  %s522_s10 = sshll.u32 %s589_s9, 4  ;;  %s523_s10 = int_to_ptr.vmem [resolvable:$false] %s522_s10 }
  0x40   : > { %v718_v1 = vstv %s139_s28  ;;  %v157_v33 = vld [vmem:[%s711_s5 + $0x88] sm:$0xff]  ;;  %v158_v37 = vld [vmem:[%s711_s5 + $0x90] sm:$0xff]  ;;  %v159_v38 = vld [vmem:[%s711_s5 + $0x98] sm:$0xff]  ;;  %p520_p11 = pnand %p519_p6, %p979_p10  ;;  %s524_s15 = scalar_lea.vmem %s523_s10, 16896 }
  0x41   : > { %v207_v4 = vmul.f32 %v718_v1, %v140_v0  ;;  %v208_v5 = vmul.f32 %v718_v1, %v141_v2  ;;  %v209_v6 = vmul.f32 %v718_v1, %v142_v3  ;;  %v210_v10 = vmul.f32 %v718_v1, %v143_v7  ;;  %v160_v39 = vld [vmem:[%s711_s5 + $0xa0] sm:$0xff]  ;;  %v161_v43 = vld [vmem:[%s711_s5 + $0xa8] sm:$0xff]  ;;  %v162_v44 = vld [vmem:[%s711_s5 + $0xb0] sm:$0xff]  ;;  %p525_p8 = scmp.lt.s32.totalorder %s922_s3, %s523_s10  ;;  %p526_p9 = scmp.lt.s32.totalorder %s524_s15, %s518_s8 }
  0x42   : > { %v211_v11 = vmul.f32 %v718_v1, %v144_v8  ;;  %v212_v12 = vmul.f32 %v718_v1, %v145_v9  ;;  %v213_v16 = vmul.f32 %v718_v1, %v146_v13  ;;  %v214_v17 = vmul.f32 %v718_v1, %v147_v14  ;;  %v163_v45 = vld [vmem:[%s711_s5 + $0xb8] sm:$0xff]  ;;  %v164_v49 = vld [vmem:[%s711_s5 + $0xc0] sm:$0xff]  ;;  %v165_v50 = vld [vmem:[%s711_s5 + $0xc8] sm:$0xff]  ;;  %p521_p12 = pneg %p520_p11 }
  0x43   : > { %273 = vst [vmem:[%s734_s20] sm:$0xff] %v207_v4  ;;  %274 = vst [vmem:[%s734_s20 + $0x8] sm:$0xff] %v208_v5  ;;  %v215_v18 = vmul.f32 %v718_v1, %v148_v15  ;;  %v216_v22 = vmul.f32 %v718_v1, %v149_v19  ;;  %v217_v23 = vmul.f32 %v718_v1, %v150_v20  ;;  %v166_v51 = vld [vmem:[%s711_s5 + $0xd0] sm:$0xff]  ;;  %v167_v55 = vld [vmem:[%s711_s5 + $0xd8] sm:$0xff]  ;;  %p527_p13 = por %p526_p9, %p525_p8 }
  0x44   : > { %275 = vst [vmem:[%s734_s20 + $0x10] sm:$0xff] %v209_v6  ;;  %276 = vst [vmem:[%s734_s20 + $0x18] sm:$0xff] %v210_v10  ;;  %v218_v24 = vmul.f32 %v718_v1, %v151_v21  ;;  %v219_v28 = vmul.f32 %v718_v1, %v152_v25  ;;  %v220_v29 = vmul.f32 %v718_v1, %v153_v26  ;;  %v168_v56 = vld [vmem:[%s711_s5 + $0xe0] sm:$0xff]  ;;  %v169_v57 = vld [vmem:[%s711_s5 + $0xe8] sm:$0xff] }
  0x45   : > { %277 = vst [vmem:[%s734_s20 + $0x20] sm:$0xff] %v211_v11  ;;  %278 = vst [vmem:[%s734_s20 + $0x28] sm:$0xff] %v212_v12  ;;  %v221_v30 = vmul.f32 %v718_v1, %v154_v27  ;;  %v222_v34 = vmul.f32 %v718_v1, %v155_v31  ;;  %v223_v35 = vmul.f32 %v718_v1, %v156_v32  ;;  %v170_v61 = vld [vmem:[%s711_s5 + $0xf0] sm:$0xff]  ;;  %v171_v62 = vld [vmem:[%s711_s5 + $0xf8] sm:$0xff]  ;;  %p528_p1 = pnand %p527_p13, %p521_p12 }
  0x46   : > { %279 = vst [vmem:[%s734_s20 + $0x30] sm:$0xff] %v213_v16  ;;  %280 = vst [vmem:[%s734_s20 + $0x38] sm:$0xff] %v214_v17  ;;  %v224_v36 = vmul.f32 %v718_v1, %v157_v33  ;;  %v225_v40 = vmul.f32 %v718_v1, %v158_v37  ;;  %v226_v41 = vmul.f32 %v718_v1, %v159_v38  ;;  %v172_v63 = vld [vmem:[%s711_s5 + $0x100] sm:$0xff]  ;;  %v173_v4 = vld [vmem:[%s711_s5 + $0x108] sm:$0xff] }
  0x47   : > { %281 = vst [vmem:[%s734_s20 + $0x40] sm:$0xff] %v215_v18  ;;  %282 = vst [vmem:[%s734_s20 + $0x48] sm:$0xff] %v216_v22  ;;  %v227_v42 = vmul.f32 %v718_v1, %v160_v39  ;;  %v228_v46 = vmul.f32 %v718_v1, %v161_v43  ;;  %v229_v47 = vmul.f32 %v718_v1, %v162_v44  ;;  %v174_v5 = vld [vmem:[%s711_s5 + $0x110] sm:$0xff]  ;;  %v175_v6 = vld [vmem:[%s711_s5 + $0x118] sm:$0xff] }
  0x48   : > { %283 = vst [vmem:[%s734_s20 + $0x50] sm:$0xff] %v217_v23  ;;  %284 = vst [vmem:[%s734_s20 + $0x58] sm:$0xff] %v218_v24  ;;  %v230_v48 = vmul.f32 %v718_v1, %v163_v45  ;;  %v231_v52 = vmul.f32 %v718_v1, %v164_v49  ;;  %v232_v53 = vmul.f32 %v718_v1, %v165_v50  ;;  %v176_v10 = vld [vmem:[%s711_s5 + $0x120] sm:$0xff]  ;;  %v177_v11 = vld [vmem:[%s711_s5 + $0x128] sm:$0xff] }
  0x49   : > { %285 = vst [vmem:[%s734_s20 + $0x60] sm:$0xff] %v219_v28  ;;  %286 = vst [vmem:[%s734_s20 + $0x68] sm:$0xff] %v220_v29  ;;  %v233_v54 = vmul.f32 %v718_v1, %v166_v51  ;;  %v234_v58 = vmul.f32 %v718_v1, %v167_v55  ;;  %v235_v59 = vmul.f32 %v718_v1, %v168_v56  ;;  %v178_v12 = vld [vmem:[%s711_s5 + $0x130] sm:$0xff]  ;;  %v179_v16 = vld [vmem:[%s711_s5 + $0x138] sm:$0xff] }
  0x4a   : > { %287 = vst [vmem:[%s734_s20 + $0x70] sm:$0xff] %v221_v30  ;;  %288 = vst [vmem:[%s734_s20 + $0x78] sm:$0xff] %v222_v34  ;;  %v236_v60 = vmul.f32 %v718_v1, %v169_v57  ;;  %v237_v0 = vmul.f32 %v718_v1, %v170_v61  ;;  %v238_v2 = vmul.f32 %v718_v1, %v171_v62  ;;  %v180_v17 = vld [vmem:[%s711_s5 + $0x140] sm:$0xff]  ;;  %v181_v18 = vld [vmem:[%s711_s5 + $0x148] sm:$0xff] }
  0x4b   : > { %289 = vst [vmem:[%s734_s20 + $0x80] sm:$0xff] %v223_v35  ;;  %290 = vst [vmem:[%s734_s20 + $0x88] sm:$0xff] %v224_v36  ;;  %v239_v3 = vmul.f32 %v718_v1, %v172_v63  ;;  %v240_v7 = vmul.f32 %v718_v1, %v173_v4  ;;  %v241_v8 = vmul.f32 %v718_v1, %v174_v5  ;;  %v182_v22 = vld [vmem:[%s711_s5 + $0x150] sm:$0xff]  ;;  %v183_v23 = vld [vmem:[%s711_s5 + $0x158] sm:$0xff] }
  0x4c   : > { %291 = vst [vmem:[%s734_s20 + $0x90] sm:$0xff] %v225_v40  ;;  %292 = vst [vmem:[%s734_s20 + $0x98] sm:$0xff] %v226_v41  ;;  %v242_v9 = vmul.f32 %v718_v1, %v175_v6  ;;  %v243_v13 = vmul.f32 %v718_v1, %v176_v10  ;;  %v244_v14 = vmul.f32 %v718_v1, %v177_v11  ;;  %v184_v24 = vld [vmem:[%s711_s5 + $0x160] sm:$0xff]  ;;  %v185_v28 = vld [vmem:[%s711_s5 + $0x168] sm:$0xff] }
  0x4d   : > { %293 = vst [vmem:[%s734_s20 + $0xa0] sm:$0xff] %v227_v42  ;;  %294 = vst [vmem:[%s734_s20 + $0xa8] sm:$0xff] %v228_v46  ;;  %v245_v15 = vmul.f32 %v718_v1, %v178_v12  ;;  %v246_v19 = vmul.f32 %v718_v1, %v179_v16  ;;  %v247_v20 = vmul.f32 %v718_v1, %v180_v17  ;;  %v186_v29 = vld [vmem:[%s711_s5 + $0x170] sm:$0xff]  ;;  %v187_v30 = vld [vmem:[%s711_s5 + $0x178] sm:$0xff] }
  0x4e   : > { %295 = vst [vmem:[%s734_s20 + $0xb0] sm:$0xff] %v229_v47  ;;  %296 = vst [vmem:[%s734_s20 + $0xb8] sm:$0xff] %v230_v48  ;;  %v248_v21 = vmul.f32 %v718_v1, %v181_v18  ;;  %v249_v25 = vmul.f32 %v718_v1, %v182_v22  ;;  %v250_v26 = vmul.f32 %v718_v1, %v183_v23  ;;  %v188_v34 = vld [vmem:[%s711_s5 + $0x180] sm:$0xff]  ;;  %v189_v35 = vld [vmem:[%s711_s5 + $0x188] sm:$0xff] }
  0x4f   : > { %297 = vst [vmem:[%s734_s20 + $0xc0] sm:$0xff] %v231_v52  ;;  %298 = vst [vmem:[%s734_s20 + $0xc8] sm:$0xff] %v232_v53  ;;  %v251_v27 = vmul.f32 %v718_v1, %v184_v24  ;;  %v252_v31 = vmul.f32 %v718_v1, %v185_v28  ;;  %v253_v32 = vmul.f32 %v718_v1, %v186_v29  ;;  %v190_v36 = vld [vmem:[%s711_s5 + $0x190] sm:$0xff]  ;;  %v191_v40 = vld [vmem:[%s711_s5 + $0x198] sm:$0xff] }
  0x50   : > { %299 = vst [vmem:[%s734_s20 + $0xd0] sm:$0xff] %v233_v54  ;;  %300 = vst [vmem:[%s734_s20 + $0xd8] sm:$0xff] %v234_v58  ;;  %v254_v33 = vmul.f32 %v718_v1, %v187_v30  ;;  %v255_v37 = vmul.f32 %v718_v1, %v188_v34  ;;  %v256_v38 = vmul.f32 %v718_v1, %v189_v35  ;;  %v192_v41 = vld [vmem:[%s711_s5 + $0x1a0] sm:$0xff]  ;;  %v193_v42 = vld [vmem:[%s711_s5 + $0x1a8] sm:$0xff] }
  0x51   : > { %301 = vst [vmem:[%s734_s20 + $0xe0] sm:$0xff] %v235_v59  ;;  %302 = vst [vmem:[%s734_s20 + $0xe8] sm:$0xff] %v236_v60  ;;  %v257_v39 = vmul.f32 %v718_v1, %v190_v36  ;;  %v258_v43 = vmul.f32 %v718_v1, %v191_v40  ;;  %v259_v44 = vmul.f32 %v718_v1, %v192_v41  ;;  %v194_v46 = vld [vmem:[%s711_s5 + $0x1b0] sm:$0xff]  ;;  %v195_v47 = vld [vmem:[%s711_s5 + $0x1b8] sm:$0xff] }
  0x52   : > { %303 = vst [vmem:[%s734_s20 + $0xf0] sm:$0xff] %v237_v0  ;;  %304 = vst [vmem:[%s734_s20 + $0xf8] sm:$0xff] %v238_v2  ;;  %v260_v45 = vmul.f32 %v718_v1, %v193_v42  ;;  %v196_v48 = vld [vmem:[%s711_s5 + $0x1c0] sm:$0xff]  ;;  %v261_v49 = vmul.f32 %v718_v1, %v194_v46  ;;  %v262_v50 = vmul.f32 %v718_v1, %v195_v47  ;;  %v197_v52 = vld [vmem:[%s711_s5 + $0x1c8] sm:$0xff] }
  0x53   : > { %305 = vst [vmem:[%s734_s20 + $0x100] sm:$0xff] %v239_v3  ;;  %306 = vst [vmem:[%s734_s20 + $0x108] sm:$0xff] %v240_v7  ;;  %v263_v51 = vmul.f32 %v718_v1, %v196_v48  ;;  %v198_v53 = vld [vmem:[%s711_s5 + $0x1d0] sm:$0xff]  ;;  %v199_v54 = vld [vmem:[%s711_s5 + $0x1d8] sm:$0xff]  ;;  %v264_v55 = vmul.f32 %v718_v1, %v197_v52 }
  0x54   : > { %307 = vst [vmem:[%s734_s20 + $0x110] sm:$0xff] %v241_v8  ;;  %308 = vst [vmem:[%s734_s20 + $0x118] sm:$0xff] %v242_v9  ;;  %v265_v56 = vmul.f32 %v718_v1, %v198_v53  ;;  %v266_v57 = vmul.f32 %v718_v1, %v199_v54  ;;  %v200_v58 = vld [vmem:[%s711_s5 + $0x1e0] sm:$0xff]  ;;  %v201_v59 = vld [vmem:[%s711_s5 + $0x1e8] sm:$0xff] }
  0x55   : > { %309 = vst [vmem:[%s734_s20 + $0x120] sm:$0xff] %v243_v13  ;;  %310 = vst [vmem:[%s734_s20 + $0x128] sm:$0xff] %v244_v14  ;;  %v202_v60 = vld [vmem:[%s711_s5 + $0x1f0] sm:$0xff]  ;;  %v267_v61 = vmul.f32 %v718_v1, %v200_v58  ;;  %v268_v62 = vmul.f32 %v718_v1, %v201_v59  ;;  %v203_v0 = vld [vmem:[%s711_s5 + $0x1f8] sm:$0xff] }
  0x56   : > { %311 = vst [vmem:[%s734_s20 + $0x130] sm:$0xff] %v245_v15  ;;  %312 = vst [vmem:[%s734_s20 + $0x138] sm:$0xff] %v246_v19  ;;  %v269_v63 = vmul.f32 %v718_v1, %v202_v60  ;;  %v204_v2 = vld [vmem:[%s711_s5 + $0x200] sm:$0xff]  ;;  %v205_v3 = vld [vmem:[%s711_s5 + $0x208] sm:$0xff]  ;;  %v270_v4 = vmul.f32 %v718_v1, %v203_v0 }
  0x57   : > { %313 = vst [vmem:[%s734_s20 + $0x140] sm:$0xff] %v247_v20  ;;  %314 = vst [vmem:[%s734_s20 + $0x148] sm:$0xff] %v248_v21  ;;  %v271_v5 = vmul.f32 %v718_v1, %v204_v2  ;;  %v272_v6 = vmul.f32 %v718_v1, %v205_v3 }
  0x58   : > { %315 = vst [vmem:[%s734_s20 + $0x150] sm:$0xff] %v249_v25  ;;  %316 = vst [vmem:[%s734_s20 + $0x158] sm:$0xff] %v250_v26 }
  0x59   : > { %317 = vst [vmem:[%s734_s20 + $0x160] sm:$0xff] %v251_v27  ;;  %318 = vst [vmem:[%s734_s20 + $0x168] sm:$0xff] %v252_v31 }
  0x5a   : > { %319 = vst [vmem:[%s734_s20 + $0x170] sm:$0xff] %v253_v32  ;;  %320 = vst [vmem:[%s734_s20 + $0x178] sm:$0xff] %v254_v33 }
  0x5b   : > { %321 = vst [vmem:[%s734_s20 + $0x180] sm:$0xff] %v255_v37  ;;  %322 = vst [vmem:[%s734_s20 + $0x188] sm:$0xff] %v256_v38 }
  0x5c   : > { %323 = vst [vmem:[%s734_s20 + $0x190] sm:$0xff] %v257_v39  ;;  %324 = vst [vmem:[%s734_s20 + $0x198] sm:$0xff] %v258_v43 }
  0x5d   : > { %325 = vst [vmem:[%s734_s20 + $0x1a0] sm:$0xff] %v259_v44  ;;  %326 = vst [vmem:[%s734_s20 + $0x1a8] sm:$0xff] %v260_v45 }
  0x5e   : > { %327 = vst [vmem:[%s734_s20 + $0x1b0] sm:$0xff] %v261_v49  ;;  %328 = vst [vmem:[%s734_s20 + $0x1b8] sm:$0xff] %v262_v50 }
  0x5f   : > { %329 = vst [vmem:[%s734_s20 + $0x1c0] sm:$0xff] %v263_v51  ;;  %330 = vst [vmem:[%s734_s20 + $0x1c8] sm:$0xff] %v264_v55 }
  0x60   : > { %331 = vst [vmem:[%s734_s20 + $0x1d0] sm:$0xff] %v265_v56  ;;  %332 = vst [vmem:[%s734_s20 + $0x1d8] sm:$0xff] %v266_v57 }
  0x61   : > { %333 = vst [vmem:[%s734_s20 + $0x1e0] sm:$0xff] %v267_v61  ;;  %334 = vst [vmem:[%s734_s20 + $0x1e8] sm:$0xff] %v268_v62 }
  0x62   : > { %335 = vst [vmem:[%s734_s20 + $0x1f0] sm:$0xff] %v269_v63  ;;  %336 = vst [vmem:[%s734_s20 + $0x1f8] sm:$0xff] %v270_v4 }
  0x63   : > { %337 = vst [vmem:[%s734_s20 + $0x200] sm:$0xff] %v271_v5  ;;  %338 = vst [vmem:[%s734_s20 + $0x208] sm:$0xff] %v272_v6 }
  0x64   : > { %531 = shalt.err (!%p528_p1)
}
  0x65   : > { %s532_s17 = scalar_lea.hbm %s914_s7, 8448  ;;  %s536_s24 = scalar_lea.hbm %s973_s2, 33792 }
  0x66   : > { %p533_p3 = scmp.ne.s32.totalorder %s914_s7, %s532_s17  ;;  %p537_p0 = scmp.lt.u32.totalorder %s914_s7, %s973_s2 }
  0x67   : > { %p538_p2 = scmp.lt.u32.totalorder %s536_s24, %s532_s17  ;;  %p540_p6 = scmp.lt.u32.totalorder %s532_s17, %s914_s7 }
  0x68   : > { %p534_p4 = pnand %p533_p3, %p979_p10 }
  0x69   : > { %p539_p7 = por %p538_p2, %p537_p0 }
  0x6a   : > { %p535_p5 = pneg %p534_p4 }
  0x6b   : > { %p541_p11 = por %p540_p6, %p539_p7 }
  0x6d   : > { %p542_p12 = pnand %p541_p11, %p535_p5 }
  0x6f   : > { %545 = shalt.err (!%p542_p12)
}
  0x70   : > { %s590_s30 = smov 128   ;;  %s591_s5 = smov 8  }
  0x71   : > { %440 = dma.vmem_to_hbm [thread:$0]  (%p979_p10), %s922_s3, 8448, %s914_s7, %s340_s0, %s590_s30, %s590_s30, %s591_s5  }
  0x72 PF: > { %p451_p8 = scmp.ge.s32.totalorder %s584_s14, 2  ;;  %s368_s28 = sand.u32 1, %s572_s11  }
  0x73   : > { %p980_p9 = scmp.ne.s32.totalorder %s977_s22, 0  ;;  %s369_s20 = scalar_lea.sflag [#allocation6], %s368_s28 }
  0x75   : > { %p447_p13 = pnand %p451_p8, %p980_p9 }
  0x77   : > { %567 = dma.done.wait (!%p447_p13), %s369_s20, 8448  }
  0x78   : > { %569 = vsyncadd (!%p447_p13), %s369_s20, 4294958848  ;;  %p16_p1 = scmp.ge.s32.totalorder %s635_s16, 6   ;;  %s981_s11 = smov %s576_s12 }
  0x79   : > { %s982_s12 = smov %s580_s13  ;;  %s983_s13 = smov %s647_s19 }
  0x7a   : > { %s984_s14 = smov %s635_s16  ;;  %18 = sbr.rel (!%p16_p1) target bundleno = 7 (0x7), region = 69 }
  0x81   :  { %374 = vsyncpa [#allocation5], 1 }
  0x82   :  { %376 = vsyncpa [#allocation5 + $0x1], 1 }
  0x83   :  { %377 = vsyncpa [#allocation6], 1 }
  0x84   :  { %379 = vsyncpa [#allocation6 + $0x1], 1 }

</bundles_post_ra>
